<compile_context>
chip_gen: v6e
topology: v6e:2x2x1
jax: 0.10.0
libtpu: 0.0.40
codegen_flags: <defaults>
</compile_context>

<pallas_src>
import functools

import jax
import jax.numpy as jnp
from jax import lax
from jax.experimental import pallas as pl
from jax.experimental.pallas import tpu as pltpu

_HALO = 128  # right-halo width in lanes (requires kernel_size - 1 <= 128)


# ----------------------------------------------------------------------------
# Pallas kernel: stride-1 multi-channel cross-correlation, single stacked dot
#
#   y[n, o, t] = sum_{c, k} w[o, c, k] * x[n, c, t + k]
#
# Grid  : (OT, N, J, CB) = Cout-tiles x batch x Lout-tiles x Cin-blocks
#         (Cin reduction innermost; Cout tiles outermost -> weights resident)
# Blocks: w  (1, 1, TO, K*TC)   rows ordered (k, c) to match the im2col slab
#         x  (1, TC, TL) tile + (1, TC, 128) right halo
#         y  (1, TO, TL) bf16, written once per (o, n, j)
# ----------------------------------------------------------------------------
def _conv_s1_kernel(w_ref, xl_ref, xr_ref, o_ref, *acc, taps, cb_total):
    xl = xl_ref[0]                                   # (TC, TL)   bf16
    xr = xr_ref[0]                                   # (TC, 128)  bf16 halo
    tl = xl.shape[-1]
    xw = jnp.concatenate([xl, xr], axis=-1)          # (TC, TL+128)

    # In-VMEM im2col slab, rows ordered (k, c) to match the weight layout.
    slab = jnp.concatenate([xw[:, k:k + tl] for k in range(taps)], axis=0)  # (K*TC, TL)

    # One deep MXU contraction; f32 accumulation happens inside the MXU.
    part = jnp.dot(w_ref[0, 0], slab, preferred_element_type=jnp.float32)   # (TO, TL)

    if cb_total == 1:
        o_ref[0] = part.astype(o_ref.dtype)
    else:
        acc_ref = acc[0]
        cb = pl.program_id(3)

        @pl.when(cb == 0)
        def _():
            acc_ref[...] = part

        @pl.when(cb > 0)
        def _():
            acc_ref[...] += part

        @pl.when(cb == cb_total - 1)
        def _():
            o_ref[0] = acc_ref[...].astype(o_ref.dtype)


def _conv1d_s1(x, w, out_len):
    """y[n,o,t] = sum_{c,k} w[o,c,k] * x[n,c,t+k]  for t in [0, out_len).

    x: (N, Cin, L) (implicitly zero-extended on the right), w: (Cout, Cin, K).
    Returns (N, Cout, out_len) bfloat16 (bias NOT applied).
    """
    N, cin, L = x.shape
    cout, _, K = w.shape
    if K - 1 > _HALO:
        raise ValueError("kernel_size - 1 must be <= 128")

    # --- tile sizes -----------------------------------------------------------
    TL = min(512, 128 * pl.cdiv(out_len, 128))       # Lout tile (lane dim, mult of 128)
    J = pl.cdiv(out_len, TL)
    lout_p = J * TL

    cin16 = 16 * pl.cdiv(cin, 16)                    # bf16 sublane packing
    TC = min(256, cin16)                             # Cin block (reduction tile)
    CB = pl.cdiv(cin16, TC)
    cin_p = CB * TC
    # TODO(synk): when CB > 1 weights are re-streamed per (n, j); make the Cin
    # reduction an in-kernel fori_loop over a resident weight ref for huge Cin.

    cout16 = 16 * pl.cdiv(cout, 16)
    TO = min(256, cout16)                            # Cout tile
    OT = pl.cdiv(cout16, TO)
    cout_p = OT * TO

    # --- x buffer: (N, cin_p, J*TL + HALO), zero-padded, bf16 -----------------
    l_total = lout_p + _HALO
    l_keep = min(L, l_total)
    x_buf = jnp.zeros((N, cin_p, l_total), jnp.bfloat16)
    x_buf = x_buf.at[:, :cin, :l_keep].set(x[:, :, :l_keep].astype(jnp.bfloat16))

    # --- weights: (CB, OT, TO, K*TC) bf16, contraction rows ordered (k, c) ----
    w_p = jnp.zeros((cout_p, cin_p, K), jnp.bfloat16)
    w_p = w_p.at[:cout, :cin, :].set(w.astype(jnp.bfloat16))
    w_arr = jnp.transpose(w_p.reshape(cout_p, CB, TC, K),
                          (1, 0, 3, 2)).reshape(CB, OT, TO, K * TC)

    kernel = functools.partial(_conv_s1_kernel, taps=K, cb_total=CB)
    scratch = [pltpu.VMEM((TO, TL), jnp.float32)] if CB > 1 else []

    # Actual per-step footprint (double-buffered inputs/outputs + slab temp).
    vmem_bytes = (2 * TO * K * TC * 2           # weights
                  + 2 * TC * TL * 2             # x tile
                  + 2 * TC * _HALO * 2          # halo
                  + 2 * TO * TL * 2             # bf16 output
                  + 2 * K * TC * TL * 2         # im2col slab temp (generous)
                  + TO * TL * 4)                # f32 accumulator (if CB > 1)
    vmem_limit = int(min(max(vmem_bytes + (8 << 20), 32 << 20), 48 << 20))

    hb = TL // _HALO
    y = pl.pallas_call(
        kernel,
        out_shape=jax.ShapeDtypeStruct((N, cout_p, lout_p), jnp.bfloat16),
        grid=(OT, N, J, CB),
        in_specs=[
            pl.BlockSpec((1, 1, TO, K * TC), lambda o, n, j, c: (c, o, 0, 0)),  # weights
            pl.BlockSpec((1, TC, TL), lambda o, n, j, c: (n, c, j)),            # x tile j
            pl.BlockSpec((1, TC, _HALO), lambda o, n, j, c: (n, c, (j + 1) * hb)),  # 128-lane halo
        ],
        out_specs=pl.BlockSpec((1, TO, TL), lambda o, n, j, c: (n, o, j)),
        scratch_shapes=scratch,
        compiler_params=pltpu.CompilerParams(
            dimension_semantics=("parallel", "parallel", "parallel", "arbitrary"),
            vmem_limit_bytes=vmem_limit,
        ),
    )(w_arr, x_buf, x_buf)
    return y[:, :cout, :out_len]


def _interleave_phases(yp, phases, cout, q_len):
    """yp: (N, phases*cout, q_len) with row = r*cout + o  ->  (N, cout, q_len*phases)."""
    N = yp.shape[0]
    return jnp.transpose(yp.reshape(N, phases, cout, q_len),
                         (0, 2, 3, 1)).reshape(N, cout, q_len * phases)


# ----------------------------------------------------------------------------
# Transpose1dLayer forward (use_batch_norm=False)
# ----------------------------------------------------------------------------
def transpose1d_layer(x, w, b, *, kernel_size, stride, padding=11,
                      upsample=None, output_padding=0):
    # TODO(synk): use_batch_norm=True path (nn.BatchNorm1d) not implemented; module default is False.
    N, cin, lin = x.shape
    K = kernel_size

    if upsample:
        # interpolate(mode='nearest', scale=U) -> ConstantPad1d(K//2, 0) -> Conv1d(K, stride)
        # w: (Cout, Cin, K)
        U = int(upsample)
        P = K // 2
        lout = (lin * U + 2 * P - K) // stride + 1
        if stride == 1:                              # wavegan's actual configuration
            # Input-polyphase over U: fold the nearest-neighbour repeat into per-phase
            # effective kernels (sum of taps hitting the same original sample); the
            # U-times-larger activation never touches HBM.
            cout = w.shape[0]
            m_lo = (0 - P) // U
            m_hi = ((U - 1) + (K - 1) - P) // U
            keff = m_hi - m_lo + 1
            m = (jnp.arange(U)[:, None] + jnp.arange(K)[None, :] - P) // U - m_lo   # (U, K)
            onehot = (m[:, :, None] == jnp.arange(keff)[None, None, :]).astype(w.dtype)
            w_big = jnp.einsum('ock,rkm->rocm', w, onehot).reshape(U * cout, cin, keff)
            q_len = pl.cdiv(lout, U)
            x_l = jnp.pad(x, ((0, 0), (0, 0), (-m_lo, 0)))
            yp = _conv1d_s1(x_l, w_big, q_len)                      # (N, U*cout, q_len) bf16
            y = _interleave_phases(yp, U, cout, q_len)[:, :, :lout]
            return y.astype(jnp.float32) + b[None, :, None]
        # TODO(synk): strided Conv1d fast path (input-polyphase over stride); dense+subsample
        # fallback below is correct but does stride x extra work.
        x_up = jnp.repeat(x, U, axis=2)
        x_pad = jnp.pad(x_up, ((0, 0), (0, 0), (P, P)))
        dense = _conv1d_s1(x_pad, w, (lout - 1) * stride + 1)
        return dense[:, :, ::stride].astype(jnp.float32) + b[None, :, None]

    # nn.ConvTranspose1d(Cin, Cout, K, stride, padding, output_padding), w: (Cin, Cout, K)
    # Output-polyphase decomposition: with t + padding = stride*Q + r, only taps
    # k = stride*j + r contribute, so phase r is a stride-1 correlation of x with the
    # flipped sub-kernel w[:, :, r::stride]; all `stride` phases are folded into the
    # output-channel axis of one Pallas call (no structurally-zero columns on the MXU).
    cout = w.shape[1]
    s = stride
    lout = (lin - 1) * s - 2 * padding + K + output_padding
    kmax = pl.cdiv(K, s)                             # taps per phase (zero-padded)
    q_len = pl.cdiv(padding + lout, s)               # stride-1 outputs needed per phase

    # Phase-r kernel: Wr[o, c, k'] = w[c, o, s*(kmax-1-k') + r]  (0 if tap >= K)
    taps = s * (kmax - 1 - jnp.arange(kmax))[None, :] + jnp.arange(s)[:, None]   # (s, kmax)
    valid = taps < K
    wg = jnp.take(w, jnp.where(valid, taps, 0).reshape(-1), axis=2)
    wg = wg.reshape(cin, cout, s, kmax) * valid[None, None].astype(w.dtype)
    w_big = jnp.transpose(wg, (2, 1, 0, 3)).reshape(s * cout, cin, kmax)   # row = r*cout + o
    b_f32 = b.astype(jnp.float32)

    xp = jnp.pad(x, ((0, 0), (0, 0), (kmax - 1, 0)))  # left halo for the flipped taps
    yp = _conv1d_s1(xp, w_big, q_len)                 # (N, s*cout, q_len) bf16

    # Interleave phases:  y[t] = yp[((t+padding) % s)*cout + o, (t+padding) // s]
    y_ext = _interleave_phases(yp, s, cout, q_len)
    y = y_ext[:, :, padding:padding + lout]
    return y.astype(jnp.float32) + b_f32[None, :, None]


# ----------------------------------------------------------------------------
# Pure-JAX reference (sanity check only)
# ----------------------------------------------------------------------------
def _ref_forward(x, w, b, *, kernel_size, stride, padding=11,
                 upsample=None, output_padding=0):
    K = kernel_size
    if upsample:
        x_up = jnp.repeat(x, int(upsample), axis=2)
        pad = K // 2
        x_pad = jnp.pad(x_up, ((0, 0), (0, 0), (pad, pad)))
        y = lax.conv_general_dilated(x_pad, w, window_strides=(stride,),
                                     padding=[(0, 0)],
                                     dimension_numbers=("NCH", "OIH", "NCH"))
    else:
        w_t = jnp.flip(jnp.transpose(w, (1, 0, 2)), axis=2)
        y = lax.conv_general_dilated(
            x, w_t, window_strides=(1,),
            padding=[(K - 1 - padding, K - 1 - padding + output_padding)],
            lhs_dilation=(stride,),
            dimension_numbers=("NCH", "OIH", "NCH"))
    return y + b[None, :, None]


# ----------------------------------------------------------------------------
if __name__ == "__main__":
    key = jax.random.PRNGKey(0)
    k1, k2, k3, k4, k5 = jax.random.split(key, 5)

    # small shapes consistent with the module (NCL input)
    N, Cin, Cout, Lin = 2, 4, 8, 16
    K, stride, padding, output_padding = 25, 4, 11, 1

    x = jax.random.normal(k1, (N, Cin, Lin), jnp.float32)

    # Tolerance sized for bf16 MXU operands and bf16 kernel output (f32 accumulation).
    TOL = dict(atol=2e-2, rtol=2e-2)

    # ---- branch 1: upsample=None -> ConvTranspose1d(Cin, Cout, K, stride, padding, out_pad)
    wt = 0.02 * jax.random.normal(k2, (Cin, Cout, K), jnp.float32)   # ConvTranspose1d weight
    bt = 0.02 * jax.random.normal(k3, (Cout,), jnp.float32)
    y_t = transpose1d_layer(x, wt, bt, kernel_size=K, stride=stride,
                            padding=padding, output_padding=output_padding, upsample=None)
    y_t = jax.block_until_ready(y_t)
    Lout_t = (Lin - 1) * stride - 2 * padding + K + output_padding
    assert y_t.shape == (N, Cout, Lout_t), y_t.shape
    y_t_ref = _ref_forward(x, wt, bt, kernel_size=K, stride=stride,
                           padding=padding, output_padding=output_padding, upsample=None)
    assert jnp.allclose(y_t, y_t_ref, **TOL), float(jnp.max(jnp.abs(y_t - y_t_ref)))

    # ---- branch 2: upsample=4 -> nearest-upsample + ConstantPad1d(K//2) + Conv1d(K, stride=1)
    upsample = 4
    wc = 0.02 * jax.random.normal(k4, (Cout, Cin, K), jnp.float32)   # conv1d.weight ~ N(0, 0.02)
    bc = 0.02 * jax.random.normal(k5, (Cout,), jnp.float32)
    y_u = transpose1d_layer(x, wc, bc, kernel_size=K, stride=1,
                            padding=padding, upsample=upsample)
    y_u = jax.block_until_ready(y_u)
    Lout_u = (Lin * upsample + 2 * (K // 2) - K) // 1 + 1
    assert y_u.shape == (N, Cout, Lout_u), y_u.shape
    y_u_ref = _ref_forward(x, wc, bc, kernel_size=K, stride=1,
                           padding=padding, upsample=upsample)
    assert jnp.allclose(y_u, y_u_ref, **TOL), float(jnp.max(jnp.abs(y_u - y_u_ref)))

    print("KERNEL_OK")
</pallas_src>

<mosaic_0001>
module attributes {stable_mosaic.version = 11 : i64} {
  func.func @_conv_s1_kernel(%arg0: i32, %arg1: i32, %arg2: i32, %arg3: i32, %arg4: memref<1x1x32x112xbf16, #tpu.memory_space<vmem>>, %arg5: memref<1x16x128xbf16, #tpu.memory_space<vmem>>, %arg6: memref<1x16x128xbf16, #tpu.memory_space<vmem>>, %arg7: memref<1x32x128xbf16, #tpu.memory_space<vmem>>) attributes {dimension_semantics = [#tpu.dimension_semantics<parallel>, #tpu.dimension_semantics<parallel>, #tpu.dimension_semantics<parallel>, #tpu.dimension_semantics<arbitrary>], iteration_bounds = array<i64: 1, 2, 1, 1>, scalar_prefetch = 0 : i64, scratch_operands = 0 : i64, tpu.core_type = #tpu.core_type<tc>, window_params = [{transform_indices = @transform_0, window_bounds = array<i64: 1, 1, 32, 112>}, {transform_indices = @transform_1, window_bounds = array<i64: 1, 16, 128>}, {transform_indices = @transform_2, window_bounds = array<i64: 1, 16, 128>}, {transform_indices = @transform_3, window_bounds = array<i64: 1, 32, 128>}]} {
    %c0 = arith.constant 0 : index
    %c0_0 = arith.constant 0 : index
    %c0_1 = arith.constant 0 : index
    %0 = vector.load %arg5[%c0, %c0_0, %c0_1] : memref<1x16x128xbf16, #tpu.memory_space<vmem>>, vector<1x16x128xbf16>
    %1 = vector.shape_cast %0 : vector<1x16x128xbf16> to vector<16x128xbf16>
    %c0_2 = arith.constant 0 : index
    %c0_3 = arith.constant 0 : index
    %c0_4 = arith.constant 0 : index
    %2 = vector.load %arg6[%c0_2, %c0_3, %c0_4] : memref<1x16x128xbf16, #tpu.memory_space<vmem>>, vector<1x16x128xbf16>
    %3 = vector.shape_cast %2 : vector<1x16x128xbf16> to vector<16x128xbf16>
    %4 = tpu.concatenate %1, %3 in 1 : vector<16x128xbf16>, vector<16x128xbf16> -> vector<16x256xbf16>
    %5 = vector.extract_strided_slice %4 {offsets = [0, 0], sizes = [16, 128], strides = [1, 1]} : vector<16x256xbf16> to vector<16x128xbf16>
    %6 = vector.extract_strided_slice %4 {offsets = [0, 1], sizes = [16, 128], strides = [1, 1]} : vector<16x256xbf16> to vector<16x128xbf16>
    %7 = vector.extract_strided_slice %4 {offsets = [0, 2], sizes = [16, 128], strides = [1, 1]} : vector<16x256xbf16> to vector<16x128xbf16>
    %8 = vector.extract_strided_slice %4 {offsets = [0, 3], sizes = [16, 128], strides = [1, 1]} : vector<16x256xbf16> to vector<16x128xbf16>
    %9 = vector.extract_strided_slice %4 {offsets = [0, 4], sizes = [16, 128], strides = [1, 1]} : vector<16x256xbf16> to vector<16x128xbf16>
    %10 = vector.extract_strided_slice %4 {offsets = [0, 5], sizes = [16, 128], strides = [1, 1]} : vector<16x256xbf16> to vector<16x128xbf16>
    %11 = vector.extract_strided_slice %4 {offsets = [0, 6], sizes = [16, 128], strides = [1, 1]} : vector<16x256xbf16> to vector<16x128xbf16>
    %12 = tpu.concatenate %5, %6, %7, %8, %9, %10, %11 in 0 : vector<16x128xbf16>, vector<16x128xbf16>, vector<16x128xbf16>, vector<16x128xbf16>, vector<16x128xbf16>, vector<16x128xbf16>, vector<16x128xbf16> -> vector<112x128xbf16>
    %c0_5 = arith.constant 0 : index
    %c0_6 = arith.constant 0 : index
    %c0_7 = arith.constant 0 : index
    %c0_8 = arith.constant 0 : index
    %13 = vector.load %arg4[%c0_5, %c0_6, %c0_7, %c0_8] : memref<1x1x32x112xbf16, #tpu.memory_space<vmem>>, vector<1x1x32x112xbf16>
    %14 = vector.shape_cast %13 : vector<1x1x32x112xbf16> to vector<32x112xbf16>
    %cst = arith.constant dense<0.000000e+00> : vector<32x128xf32>
    %15 = tpu.matmul %14, %12, %cst {dimension_numbers = #tpu.dot_dimension_numbers<[1], [0], [0], [1], [0, 0, 1, 1], [], []>} : vector<32x112xbf16>, vector<112x128xbf16>, vector<32x128xf32> -> vector<32x128xf32>
    %16 = arith.truncf %15 : vector<32x128xf32> to vector<32x128xbf16>
    %c0_9 = arith.constant 0 : index
    %c0_10 = arith.constant 0 : index
    %c0_11 = arith.constant 0 : index
    %17 = vector.load %arg7[%c0_9, %c0_10, %c0_11] : memref<1x32x128xbf16, #tpu.memory_space<vmem>>, vector<1x32x128xbf16>
    %18 = vector.shape_cast %17 : vector<1x32x128xbf16> to vector<32x128xbf16>
    %19 = vector.shape_cast %16 : vector<32x128xbf16> to vector<1x32x128xbf16>
    tpu.vector_store %arg7[%c0_9, %c0_10, %c0_11], %19 {strides = array<i32>} : memref<1x32x128xbf16, #tpu.memory_space<vmem>>, vector<1x32x128xbf16>,
    return
  }
  func.func @transform_0(%arg0: i32, %arg1: i32, %arg2: i32, %arg3: i32) -> (i32, i32, i32, i32) {
    %c0_i32 = arith.constant 0 : i32
    %c0_i32_0 = arith.constant 0 : i32
    %c0_i32_1 = arith.constant 0 : i32
    return %arg3, %arg0, %c0_i32, %c0_i32_0 : i32, i32, i32, i32
  }
  func.func @transform_1(%arg0: i32, %arg1: i32, %arg2: i32, %arg3: i32) -> (i32, i32, i32) {
    %c0_i32 = arith.constant 0 : i32
    return %arg1, %arg3, %arg2 : i32, i32, i32
  }
  func.func @transform_2(%arg0: i32, %arg1: i32, %arg2: i32, %arg3: i32) -> (i32, i32, i32) {
    %c1_i32 = arith.constant 1 : i32
    %0 = arith.addi %arg2, %c1_i32 : i32
    %c1_i32_0 = arith.constant 1 : i32
    %1 = arith.muli %0, %c1_i32_0 : i32
    %c0_i32 = arith.constant 0 : i32
    return %arg1, %arg3, %1 : i32, i32, i32
  }
  func.func @transform_3(%arg0: i32, %arg1: i32, %arg2: i32, %arg3: i32) -> (i32, i32, i32) {
    %c0_i32 = arith.constant 0 : i32
    return %arg1, %arg0, %arg2 : i32, i32, i32
  }
}

</mosaic_0001>

<bundles_post_ra>
// kernel: tpu_custom_call.1
= control target key start
LH: loop header
LB: loop body
LE: loop exit
PB: predicated region body
PF: predicated region fallthrough
CT: control target
= control target key end

     0   :  { %8 = vsyncpa [#allocation3], 0  ;;  %s1194_s0 = inlined_call_operand.hbm [shape: bf16[1,1,32,112], index: 0, kind: input, shape index: {}]   ;;  %s1195_s1 = inlined_call_operand.hbm [shape: bf16[2,16,256], index: 1, kind: input, shape index: {}]   ;;  %s1196_s2 = inlined_call_operand.hbm [shape: bf16[2,16,256], index: 2, kind: input, shape index: {}]   ;;  %s1197_s3 = inlined_call_operand.hbm [shape: bf16[2,32,128], index: 3, kind: output, shape index: {}]  }
   0x1   :  { %9 = vsyncpa [#allocation6], 0 }
   0x2   :  { %11 = vsyncpa [#allocation6 + $0x1], 0 }
   0x3   :  { %12 = vsyncpa [#allocation4], 0 }
   0x4   :  { %14 = vsyncpa [#allocation4 + $0x1], 0  ;;  %s981_s12 = smov 0   ;;  %s983_s13 = smov 0  }
   0x5   :  { %s985_s14 = smov 0   ;;  %s987_s15 = smov 0  }
   0x6   :  { %s989_s16 = smov 0   ;;  %s991_s17 = smov 0  }
   0x7 LB: > { %s42_s18 = sadd.s32 1, %s940_s16  ;;  %s85_s19 = sadd.s32 1, %s932_s14  ;;  %s944_s17 = sphi %s991_s17, %s20_s17   ;;  %s940_s16 = sphi %s989_s16, %s1216_s16   ;;  %s936_s15 = sphi %s987_s15, %s1215_s15   ;;  %s932_s14 = sphi %s985_s14, %s1214_s14   ;;  %s928_s13 = sphi %s983_s13, %s1213_s13   ;;  %s924_s12 = sphi %s981_s12, %s1212_s12  }
   0x8   : > { %p44_p0 = scmp.ge.s32.totalorder %s42_s18, 2  ;;  %p92_p1 = scmp.ne.s32.totalorder %s932_s14, %s928_s13 }
   0x9   : > { %p93_p2 = scmp.eq.s32.totalorder %s944_s17, 0  ;;  %p710_p6 = scmp.lt.s32.totalorder %s944_s17, 2 }
   0xa   : > { %s1218_s18 = smov (%p44_p0, %s42_s18), 0  ;;  %s202_s22 = sand.u32 1, %s944_s17  }
   0xb   : > { %p1021_p3 = por %p93_p2, %p92_p1  ;;  %s78_s21 = ssub.s32 %s940_s16, %s1218_s18 }
   0xc   : > { %p83_p5 = scmp.eq.s32.totalorder %s78_s21, 0  ;;  %s204_s23 = sand.u32 1, %s932_s14  }
   0xd   : > { %s1034_s25 = sshll.u32 %s204_s23, 3  ;;  %s639_s26 = sshll.u32 %s940_s16, 8 }
   0xe   : > { %s1032_s24 = scalar_select %p83_p5, %s932_s14, %s85_s19  }
   0xf   : > { %s216_s29 = scalar_lea.hbm %s1195_s1, %s639_s26  ;;  %s206_s30 = scalar_lea.vmem [#allocation5], %s1034_s25 }
  0x10   : > { %s217_s4 = sshll.u32 %s206_s30, 4  ;;  %p1043_p7 = pnand %p710_p6, %p1021_p3  ;;  %s218_s4 = int_to_ptr.vmem [resolvable:$true] %s217_s4 }
  0x11   : > { %s1050_s8 = scalar_lea.hbm %s1196_s2, %s639_s26  ;;  %s1052_s9 = scalar_lea.sflag [#allocation6], %s202_s22 }
  0x12   : > { %p779_p8 = pneg %p1043_p7  ;;  %s790_s10 = scalar_lea.vmem %s218_s4, 128 }
  0x13   : > { %p791_p9 = scmp.ne.s32.totalorder %s218_s4, %s790_s10  ;;  %s946_s11 = smov [#allocation5]  }
  0x14   : > { %s795_s19 = sshll.u32 %s946_s11, 4  ;;  %s796_s19 = int_to_ptr.vmem [resolvable:$false] %s795_s19 }
  0x15   : > { %p793_p10 = pnand %p791_p9, %p779_p8  ;;  %s797_s20 = scalar_lea.vmem %s796_s19, 256 }
  0x16   : > { %p798_p12 = scmp.lt.s32.totalorder %s218_s4, %s796_s19  ;;  %p799_p13 = scmp.lt.s32.totalorder %s797_s20, %s790_s10 }
  0x17   : > { %p794_p11 = pneg %p793_p10 }
  0x18   : > { %p800_p0 = por %p799_p13, %p798_p12 }
  0x1a   : > { %p801_p2 = pnand %p800_p0, %p794_p11 }
  0x1c   : > { %804 = shalt.err (!%p801_p2)
}
  0x1d   : > { %s947_s21 = smov 128   ;;  %s948_s22 = smov 64  }
  0x1e   : > { %s949_s23 = smov 4   ;;  %s524_s26 = scalar_lea.hbm %s1050_s8, 64 }
  0x1f   : > { %701 = dma.hbm_to_vmem [thread:$0]  (!%p1043_p7), %s216_s29, 128, %s218_s4, %s1052_s9, %s947_s21, %s948_s22, %s949_s23  }
  0x20   : > { %s231_s27 = scalar_lea.vmem [#allocation7], %s1034_s25  ;;  %s1068_s30 = sadd.s32 4294967295, %s944_s17  }
  0x21   : > { %s243_s28 = sshll.u32 %s231_s27, 4  ;;  %s609_s6 = sadd.s32 4294967294, %s944_s17   ;;  %s244_s28 = int_to_ptr.vmem [resolvable:$true] %s243_s28 }
  0x22   : > { %p98_p3 = scmp.ne.s32.totalorder %s928_s13, %s924_s12  ;;  %p1198_p5 = scmp.eq.s32.totalorder %s1068_s30, 0 }
  0x23   : > { %p158_p6 = scmp.eq.s32.totalorder %s1068_s30, 1  ;;  %p164_p9 = scmp.eq.s32.totalorder %s609_s6, 1 }
  0x24   : > { %p610_p10 = scmp.ge.s32.totalorder %s944_s17, 1  ;;  %p1078_p11 = por %p1198_p5, %p98_p3 }
  0x25   : > { %p1085_p12 = por %p158_p6, %p92_p1  ;;  %p1089_p13 = por %p164_p9, %p98_p3 }
  0x26   : > { %p171_p0 = scmp.lt.s32.totalorder %s944_s17, 3  ;;  %s950_s10 = smov [#allocation2]  }
  0x27   : > { %s1203_s25 = scalar_select %p1085_p12, 1, 0 }
  0x28   : > { %s1204_s29 = scalar_select %p1089_p13, 1, 0 }
  0x29   : > { %p1094_p2 = pnand %p610_p10, %p171_p0  ;;  %s188_s11 = sshll.u32 %s950_s10, 4  ;;  %s189_s11 = int_to_ptr.vmem [resolvable:$true] %s188_s11 }
  0x2a   : > { %s818_s19 = scalar_lea.vmem %s244_s28, 128  ;;  %s951_s20 = smov [#allocation7]  }
  0x2b   : > { %p694_p4 = pneg %p1094_p2  ;;  %p819_p1 = scmp.ne.s32.totalorder %s244_s28, %s818_s19 }
  0x2c   : > { %s823_s27 = sshll.u32 %s951_s20, 4  ;;  %s824_s27 = int_to_ptr.vmem [resolvable:$false] %s823_s27 }
  0x2d   : > { %p821_p6 = pnand %p819_p1, %p779_p8  ;;  %s825_s6 = scalar_lea.vmem %s824_s27, 256 }
  0x2e   : > { %p826_p9 = scmp.lt.s32.totalorder %s244_s28, %s824_s27  ;;  %p827_p10 = scmp.lt.s32.totalorder %s825_s6, %s818_s19 }
  0x2f   : > { %p822_p3 = pneg %p821_p6 }
  0x30   : > { %p828_p0 = por %p827_p10, %p826_p9 }
  0x32   : > { %p829_p5 = pnand %p828_p0, %p822_p3 }
  0x34   : > { %832 = shalt.err (!%p829_p5)
}
  0x35   : > { %704 = dma.hbm_to_vmem [thread:$0]  (!%p1043_p7), %s524_s26, 128, %s244_s28, %s1052_s9, %s947_s21, %s948_s22, %s949_s23  }
  0x36   : > { %p1206_p8 = scmp.eq.s32.totalorder %s1068_s30, 0  ;;  %s845_s10 = scalar_lea.vmem %s189_s11, 256 }
  0x37   : > { %p846_p3 = scmp.ne.s32.totalorder %s189_s11, %s845_s10  ;;  %p853_p10 = scmp.lt.s32.totalorder %s189_s11, %s189_s11 }
  0x38   : > { %p695_p1 = pnand %p694_p4, %p1206_p8  ;;  %p854_p0 = scmp.lt.s32.totalorder %s845_s10, %s845_s10 }
  0x3a   : > { %p836_p6 = pneg %p695_p1  ;;  %p855_p13 = por %p854_p0, %p853_p10 }
  0x3c   : > { %p848_p5 = pnand %p846_p3, %p836_p6 }
  0x3e   : > { %p849_p9 = pneg %p848_p5 }
  0x40   : > { %p856_p12 = pnand %p855_p13, %p849_p9 }
  0x42   : > { %859 = shalt.err (!%p856_p12)
}
  0x43   : > { %697 = dma.hbm_to_vmem [thread:$0]  (!%p695_p1), %s1194_s0, 256, %s189_s11, [#allocation3], %s948_s22, %s948_s22, %s949_s23  }
  0x44   : > { %255 = sbr.rel (%p1094_p2) target bundleno = 443 (0x1bb), region = 32  ;;  %p1207_p4 = scmp.eq.s32.totalorder (!%p1094_p2), %s1068_s30, 0 }
  0x49   : > { %911 = dma.done.wait (%p1207_p4), [#allocation3], 256   ;;  %p1208_p7 = pmov %p1207_p4 }
  0x4a   : > { %s261_s9 = sand.u32 1, %s1068_s30   ;;  %s1130_s21 = sand.u32 1, %s928_s13  }
  0x4b   : > { %913 = vsyncadd (%p1208_p7), [#allocation3], 4294967040  ;;  %s621_s26 = sshll.u32 %s1130_s21, 3  ;;  %s262_s28 = scalar_lea.sflag [#allocation6], %s261_s9 }
  0x4c   : > { %s265_s19 = scalar_lea.vmem [#allocation5], %s621_s26 }
  0x4d   : > { %915 = dma.done.wait (%p1078_p11), %s262_s28, 256  }
  0x4e   : > { %917 = vsyncadd (%p1078_p11), %s262_s28, 4294967040  ;;  %v773_v0 = vld [vmem:[%s265_s19] sm:$0xff]   ;;  %s274_s22 = scalar_lea.vmem [#allocation7], %s621_s26  ;;  %s952_s23 = smov 123   ;;  %v775_v2 = vld [vmem:[#allocation2] sm:$0xff]   ;;  %vm378_vm0 = vcmask 916480  }
  0x4f   : > { %v774_v1 = vld [vmem:[%s274_s22] sm:$0xff]   ;;  %350 = vrot.lane.b32.xlu1 %v773_v0, %s952_s23  ;;  %s953_s4 = smov 122   ;;  %s954_s30 = smov 124   ;;  %680 = vmatprep.mubr.msk.bf16.mxu0 %vm378_vm0, %v775_v2  ;;  %vm361_vm1 = vcmask 998400   ;;  %vm354_vm2 = vcmask 1006592   ;;  %vm347_vm3 = vcmask 1014784  }
  0x50   : > { %357 = vrot.lane.b32.xlu0 %v773_v0, %s953_s4  ;;  %s955_s11 = smov 125   ;;  %s956_s20 = smov 126   ;;  %vm340_vm4 = vcmask 1022976   ;;  %vm333_vm5 = vcmask 1031168   ;;  %vm326_vm6 = vcmask 1039360   ;;  %v776_v21 = vld [vmem:[#allocation2 + $0x8] sm:$0xff]  }
  0x51   : > { %s957_s7 = smov 127   ;;  %s623_s27 = sshll.u32 %s1130_s21, 4 }
  0x52   : > { %s301_s6 = scalar_lea.vmem [#allocation8], %s623_s27  ;;  %s645_s5 = sshll.u32 %s936_s15, 8 }
  0x53   : > { %352 = vrot.lane.b32.xlu1 %v774_v1, %s952_s23  ;;  %s471_s10 = sshll.u32 %s301_s6, 4  ;;  %s1146_s26 = scalar_lea.hbm %s1197_s3, %s645_s5  ;;  %s1141_s10 = int_to_ptr.vmem [resolvable:$true] %s471_s10 }
  0x54   : > { %359 = vrot.lane.b32.xlu0 %v774_v1, %s953_s4  ;;  %s455_s28 = scalar_lea.sflag [#allocation4], %s1130_s21  ;;  %s860_s19 = scalar_lea.vmem %s1141_s10, 256 }
  0x55   : > { %p861_p11 = scmp.ne.s32.totalorder %s1141_s10, %s860_s19  ;;  %p1209_p12 = scmp.ne.s32.totalorder %s1203_s25, 0 }
  0x56   : > { %s958_s15 = smov [#allocation8]  }
  0x57   : > { %345 = vrot.lane.b32.xlu1 %v774_v1, %s954_s30  ;;  %p862_p13 = pnand %p861_p11, %p1209_p12  ;;  %s864_s22 = sshll.u32 %s958_s15, 4  ;;  %s865_s22 = int_to_ptr.vmem [resolvable:$false] %s864_s22 }
  0x58   : > { %343 = vrot.lane.b32.xlu0 %v773_v0, %s954_s30  ;;  %s866_s23 = scalar_lea.vmem %s865_s22, 512  ;;  %p867_p8 = scmp.lt.s32.totalorder %s1141_s10, %s865_s22 }
  0x59   : > { %p863_p2 = pneg %p862_p13  ;;  %p868_p1 = scmp.lt.s32.totalorder %s866_s23, %s860_s19 }
  0x5b   : > { %338 = vrot.lane.b32.xlu1 %v774_v1, %s955_s11  ;;  %p869_p6 = por %p868_p1, %p867_p8 }
  0x5c   : > { %336 = vrot.lane.b32.xlu0 %v773_v0, %s955_s11 }
  0x5d   : > { %p870_p3 = pnand %p869_p6, %p863_p2 }
  0x5f   : > { %331 = vrot.lane.b32.xlu1 %v774_v1, %s956_s20 }
  0x60   : > { %329 = vrot.lane.b32.xlu0 %v773_v0, %s956_s20 }
  0x63   : > { %324 = vrot.lane.b32.xlu1 %v774_v1, %s957_s7 }
  0x64   : > { %322 = vrot.lane.b32.xlu0 %v773_v0, %s957_s7 }
  0xc1   : > { %v351_v3 = vpop.permute.xlu1 %350 }
  0xc2   : > { %v358_v4 = vpop.permute.xlu0 %357 }
  0xc5   : > { %v353_v5 = vpop.permute.xlu1 %352 }
  0xc6   : > { %v360_v6 = vpop.permute.xlu0 %359  ;;  %v355_v8 = vsel %vm354_vm2, %v351_v3, %v353_v5 }
  0xc7   : > { %v362_v7 = vsel %vm361_vm1, %v358_v4, %v360_v6 }
  0xc8   : > { %666 = vmatprep.subr.bf16.mxu0 %v362_v7 }
  0xc9   : > { %667 = vmatpush3.bf16.msra.mxu0 %v362_v7  ;;  %v346_v9 = vpop.permute.xlu1 %345 }
  0xca   : > { %668 = vmatprep.subr.bf16.mxu0 %v355_v8  ;;  %v344_v10 = vpop.permute.xlu0 %343 }
  0xcb   : > { %v348_v11 = vsel %vm347_vm3, %v344_v10, %v346_v9 }
  0xcd   : > { %669 = vmatpush3.bf16.msra.mxu0 %v355_v8  ;;  %v339_v12 = vpop.permute.xlu1 %338 }
  0xce   : > { %670 = vmatprep.subr.bf16.mxu0 %v348_v11  ;;  %v337_v13 = vpop.permute.xlu0 %336 }
  0xcf   : > { %v341_v14 = vsel %vm340_vm4, %v337_v13, %v339_v12 }
  0xd1   : > { %671 = vmatpush3.bf16.msra.mxu0 %v348_v11  ;;  %v332_v15 = vpop.permute.xlu1 %331 }
  0xd2   : > { %672 = vmatprep.subr.bf16.mxu0 %v341_v14  ;;  %v330_v16 = vpop.permute.xlu0 %329 }
  0xd3   : > { %v334_v17 = vsel %vm333_vm5, %v330_v16, %v332_v15 }
  0xd5   : > { %673 = vmatpush3.bf16.msra.mxu0 %v341_v14  ;;  %v325_v18 = vpop.permute.xlu1 %324 }
  0xd6   : > { %674 = vmatprep.subr.bf16.mxu0 %v334_v17  ;;  %v323_v19 = vpop.permute.xlu0 %322 }
  0xd7   : > { %v327_v20 = vsel %vm326_vm6, %v323_v19, %v325_v18 }
  0xd9   : > { %675 = vmatpush3.bf16.msra.mxu0 %v334_v17 }
  0xda   : > { %676 = vmatprep.subr.bf16.mxu0 %v327_v20 }
  0xdd   : > { %677 = vmatpush3.bf16.msra.mxu0 %v327_v20 }
  0xde   : > { %678 = vmatprep.subr.bf16.mxu0 %v773_v0 }
  0xe1   : > { %679 = vmatpush3.bf16.msra.mxu0 %v773_v0 }
  0xe4   : > { %681 = vmatmul.mubr.msk.bf16.vlgmr.msra.gmra.mxu0 %vm378_vm0, %v776_v21 }
 0x1a4   : > { %v682_v22 = vpop.f32.mrf.mxu0 }
 0x1a6   : > { %v419_v23 = vpop.f32.mrf.mxu0 }
 0x1a8   : > { %v683_v24 = vpop.f32.mrf.mxu0 }
 0x1a9   : > { %v654_v25 = vpack.c.bf16 %v683_v24, %v682_v22 }
 0x1aa   : > { %v422_v26 = vpop.f32.mrf.mxu0 }
 0x1ab   : > { %656 = vst [vmem:[%s301_s6 + $0x8] sm:$0xff] %v654_v25   ;;  %v649_v27 = vpack.c.bf16 %v422_v26, %v419_v23 }
 0x1ad   : > { %650 = vst [vmem:[%s301_s6] sm:$0xff] %v649_v27  }
 0x1ae   : > { %873 = shalt.err (!%p870_p3)
}
 0x1af   : > { %s874_s4 = scalar_lea.hbm %s1146_s26, 256  ;;  %s878_s20 = scalar_lea.hbm %s1197_s3, 512 }
 0x1b0   : > { %p875_p5 = scmp.ne.s32.totalorder %s1146_s26, %s874_s4  ;;  %p879_p0 = scmp.lt.s32.totalorder %s1146_s26, %s1197_s3 }
 0x1b1   : > { %p880_p4 = scmp.lt.s32.totalorder %s878_s20, %s874_s4 }
 0x1b2   : > { %p876_p9 = pnand %p875_p5, %p1209_p12 }
 0x1b3   : > { %p881_p7 = por %p880_p4, %p879_p0 }
 0x1b4   : > { %p877_p10 = pneg %p876_p9 }
 0x1b6   : > { %p882_p11 = pnand %p881_p7, %p877_p10 }
 0x1b8   : > { %885 = shalt.err (!%p882_p11)
}
 0x1b9   : > { %s959_s6 = smov 64   ;;  %s960_s5 = smov 4  }
 0x1ba   : > { %692 = dma.vmem_to_hbm [thread:$0]  (%p1209_p12), %s1141_s10, 256, %s1146_s26, %s455_s28, %s959_s6, %s959_s6, %s960_s5  }
 0x1bb PF: > { %s486_s8 = sand.u32 1, %s924_s12   ;;  %p1210_p13 = scmp.ne.s32.totalorder %s1204_s29, 0 }
 0x1bc   : > { %p1211_p2 = scmp.ge.s32.totalorder %s944_s17, 2  ;;  %s487_s9 = scalar_lea.sflag [#allocation4], %s486_s8 }
 0x1be   : > { %p706_p8 = pnand %p1211_p2, %p1210_p13 }
 0x1c0   : > { %p707_p1 = pneg %p706_p8 }
 0x1c2   : > { %919 = dma.done.wait (%p707_p1), %s487_s9, 256  }
 0x1c3   : > { %921 = vsyncadd (%p707_p1), %s487_s9, 4294967040  ;;  %s20_s17 = sadd.s32 1, %s944_s17   ;;  %s1212_s12 = smov %s928_s13 }
 0x1c4   : > { %p17_p6 = scmp.ge.s32.totalorder %s20_s17, 4   ;;  %s1213_s13 = smov %s932_s14 }
 0x1c5   : > { %s1214_s14 = smov %s1032_s24  ;;  %s1215_s15 = smov %s940_s16 }
 0x1c6   : > { %s1216_s16 = smov %s1218_s18  ;;  %19 = sbr.rel (!%p17_p6) target bundleno = 7 (0x7), region = 94 }
 0x1cb   :  { %492 = vsyncpa [#allocation3], 1 }
 0x1cc   :  { %494 = vsyncpa [#allocation3 + $0x1], 1 }
 0x1cd   :  { %495 = vsyncpa [#allocation6], 1 }
 0x1ce   :  { %497 = vsyncpa [#allocation6 + $0x1], 1 }
 0x1cf   :  { %498 = vsyncpa [#allocation4], 1 }
 0x1d0   :  { %500 = vsyncpa [#allocation4 + $0x1], 1 }

</bundles_post_ra>
